<compile_context>
chip_gen: v7x
topology: tpu7x:2x2x1
jax: 0.10.0
libtpu: 0.0.40
codegen_flags: <defaults>
</compile_context>

<pallas_src>
import math
import functools

import jax
import jax.numpy as jnp
from jax.experimental import pallas as pl
from jax.experimental.pallas import tpu as pltpu


# ---------------------------------------------------------------------------
# Buffer construction (plain JAX glue — mirrors PositionalEncoding.__init__)
# ---------------------------------------------------------------------------
def build_pos_encoding(dim_model: int, max_len: int, dtype=jnp.float32) -> jnp.ndarray:
    positions = jnp.arange(0, max_len, dtype=jnp.float32).reshape(-1, 1)       # (max_len, 1)
    division_term = jnp.exp(
        jnp.arange(0, dim_model, 2, dtype=jnp.float32) * (-math.log(10000.0) / dim_model)
    )                                                                            # (dim_model//2,)
    pe = jnp.zeros((max_len, dim_model), dtype=jnp.float32)
    pe = pe.at[:, 0::2].set(jnp.sin(positions * division_term))
    pe = pe.at[:, 1::2].set(jnp.cos(positions * division_term))
    return pe.astype(dtype)


# ---------------------------------------------------------------------------
# Pallas kernel: fused (x + pos_encoding) + inverted dropout
# ---------------------------------------------------------------------------
def _make_pe_kernel(dropout_p: float, training: bool):
    apply_dropout = training and dropout_p > 0.0

    def kernel(seed_ref, x_ref, pe_ref, o_ref):
        # x_ref / pe_ref / o_ref: (tS, D) VMEM tiles (batch dim squeezed away),
        # so the add is a straight per-vreg VPU op with no explicit broadcast.
        y = x_ref[...] + pe_ref[...]
        if apply_dropout:
            # Unique seed per grid step — otherwise every tile would reuse one mask.
            tile_id = pl.program_id(0) * pl.num_programs(1) + pl.program_id(1)
            pltpu.prng_seed(seed_ref[0] + tile_id)
            bits = pltpu.bitcast(pltpu.prng_random_bits(y.shape), jnp.uint32)
            # keep element iff uniform >= p  (inverted-dropout scaling by 1/(1-p))
            thresh = jnp.uint32(min(int(dropout_p * float(2 ** 32)), 2 ** 32 - 1))
            keep = bits >= thresh
            scale = jnp.asarray(1.0 / (1.0 - dropout_p), y.dtype)
            y = jnp.where(keep, y * scale, jnp.zeros_like(y))
            # NOTE: distributionally equivalent to torch.nn.Dropout; not bit-identical
            # (different RNG).
        o_ref[...] = y.astype(o_ref.dtype)

    return kernel


def _choose_seq_tile(S: int, D: int, itemsize: int) -> int:
    """~2 MiB (tS, D) tiles: big enough to hit the HBM roofline, small enough that
    double-buffered x/out/pe tiles fit comfortably in v7x's 64 MiB VMEM."""
    budget = 2 * 1024 * 1024
    if S * D * itemsize <= budget:
        return S                      # whole (S, D) fits; block == full dims is always legal
    rows = budget // max(1, D * itemsize)
    rows = (rows // 8) * 8            # keep the sublane dim a multiple of 8
    return int(max(8, min(rows, 512, S)))


@functools.partial(jax.jit, static_argnames=("dropout_p", "training"))
def positional_encoding_forward(token_embedding, pos_encoding, seed,
                                dropout_p: float = 0.1, training: bool = False):
    """token_embedding: (B, S, D); pos_encoding: (max_len, D); seed: int32 scalar."""
    B, S, D = token_embedding.shape
    dtype = token_embedding.dtype
    itemsize = jnp.dtype(dtype).itemsize

    pe_slice = pos_encoding[:S, :].astype(dtype)          # static slice, glue
    seed_arr = jnp.reshape(jnp.asarray(seed, jnp.int32), (1,))

    tS = _choose_seq_tile(S, D, itemsize)
    n_s = pl.cdiv(S, tS)

    kernel = _make_pe_kernel(dropout_p, training)

    cost = pl.CostEstimate(
        flops=B * S * D,
        transcendentals=0,
        bytes_accessed=(2 * B * S * D + S * D) * itemsize,
    )

    return pl.pallas_call(
        kernel,
        out_shape=jax.ShapeDtypeStruct((B, S, D), dtype),
        grid_spec=pltpu.PrefetchScalarGridSpec(
            num_scalar_prefetch=1,                         # seed lands in SMEM
            # seq-tiles outer, batch inner -> the small PE tile keeps the same block
            # index across all B inner steps and stays resident in VMEM.
            grid=(n_s, B),
            in_specs=[
                pl.BlockSpec((pl.Squeezed(), tS, D), lambda s, b, seed: (b, s, 0)),
                pl.BlockSpec((tS, D), lambda s, b, seed: (s, 0)),
            ],
            out_specs=pl.BlockSpec((pl.Squeezed(), tS, D), lambda s, b, seed: (b, s, 0)),
        ),
        compiler_params=pltpu.CompilerParams(
            dimension_semantics=("parallel", "parallel"),  # v7x: shard over both TCs
            vmem_limit_bytes=48 * 1024 * 1024,
        ),
        cost_estimate=cost,
    )(seed_arr, token_embedding, pe_slice)


if __name__ == "__main__":
    # Small deterministic config consistent with the module.
    dim_model, max_len, dropout_p = 32, 16, 0.1
    batch, seq = 2, 8

    key = jax.random.PRNGKey(0)
    token_embedding = jax.random.normal(key, (batch, seq, dim_model), dtype=jnp.float32)
    pos_encoding = build_pos_encoding(dim_model, max_len)

    # Eval-mode forward (dropout = identity): deterministic & checkable.
    out = positional_encoding_forward(token_embedding, pos_encoding, seed=0,
                                      dropout_p=dropout_p, training=False)
    out = jax.block_until_ready(out)

    ref = token_embedding + pos_encoding[:seq, :][None, :, :]
    assert out.shape == (batch, seq, dim_model)
    assert jnp.allclose(out, ref, atol=1e-6, rtol=1e-6)

    # Training path uses the TPU hardware PRNG (pltpu.prng_seed/prng_random_bits),
    # which has no CPU/interpret lowering — only exercise it on a real TPU backend.
    if jax.devices()[0].platform == "tpu":
        out_train = positional_encoding_forward(token_embedding, pos_encoding, seed=1234,
                                                dropout_p=dropout_p, training=True)
        out_train = jax.block_until_ready(out_train)
        assert out_train.shape == (batch, seq, dim_model)

    print("KERNEL_OK")
</pallas_src>

<mosaic_0001>
module attributes {stable_mosaic.version = 11 : i64} {
  func.func @kernel(%arg0: i32, %arg1: i32, %arg2: memref<1xi32, #tpu.memory_space<smem>>, %arg3: memref<1x8x32xf32, #tpu.memory_space<vmem>>, %arg4: memref<8x32xf32, #tpu.memory_space<vmem>>, %arg5: memref<1x8x32xf32, #tpu.memory_space<vmem>>) attributes {dimension_semantics = [#tpu.dimension_semantics<parallel>, #tpu.dimension_semantics<parallel>], iteration_bounds = array<i64: 1, 2>, scalar_prefetch = 1 : i64, scratch_operands = 0 : i64, tpu.core_type = #tpu.core_type<tc>, window_params = [{transform_indices = @transform_0, window_bounds = array<i64: 1, 8, 32>}, {transform_indices = @transform_1, window_bounds = array<i64: 8, 32>}, {transform_indices = @transform_2, window_bounds = array<i64: 1, 8, 32>}]} {
    %c0 = arith.constant 0 : index
    %c0_0 = arith.constant 0 : index
    %c0_1 = arith.constant 0 : index
    %0 = vector.load %arg3[%c0, %c0_0, %c0_1] : memref<1x8x32xf32, #tpu.memory_space<vmem>>, vector<1x8x32xf32>
    %1 = vector.shape_cast %0 : vector<1x8x32xf32> to vector<8x32xf32>
    %c0_2 = arith.constant 0 : index
    %c0_3 = arith.constant 0 : index
    %2 = vector.load %arg4[%c0_2, %c0_3] : memref<8x32xf32, #tpu.memory_space<vmem>>, vector<8x32xf32>
    %3 = arith.addf %1, %2 : vector<8x32xf32>
    %c0_4 = arith.constant 0 : index
    %c0_5 = arith.constant 0 : index
    %c0_6 = arith.constant 0 : index
    %4 = vector.load %arg5[%c0_4, %c0_5, %c0_6] : memref<1x8x32xf32, #tpu.memory_space<vmem>>, vector<1x8x32xf32>
    %5 = vector.shape_cast %4 : vector<1x8x32xf32> to vector<8x32xf32>
    %6 = vector.shape_cast %3 : vector<8x32xf32> to vector<1x8x32xf32>
    tpu.vector_store %arg5[%c0_4, %c0_5, %c0_6], %6 {strides = array<i32>} : memref<1x8x32xf32, #tpu.memory_space<vmem>>, vector<1x8x32xf32>,
    return
  }
  func.func @transform_0(%arg0: i32, %arg1: i32, %arg2: memref<1xi32, #tpu.memory_space<smem>>) -> (i32, i32, i32) {
    %c0_i32 = arith.constant 0 : i32
    %c0_i32_0 = arith.constant 0 : i32
    return %arg1, %arg0, %c0_i32 : i32, i32, i32
  }
  func.func @transform_1(%arg0: i32, %arg1: i32, %arg2: memref<1xi32, #tpu.memory_space<smem>>) -> (i32, i32) {
    %c0_i32 = arith.constant 0 : i32
    %c0_i32_0 = arith.constant 0 : i32
    return %arg0, %c0_i32 : i32, i32
  }
  func.func @transform_2(%arg0: i32, %arg1: i32, %arg2: memref<1xi32, #tpu.memory_space<smem>>) -> (i32, i32, i32) {
    %c0_i32 = arith.constant 0 : i32
    %c0_i32_0 = arith.constant 0 : i32
    return %arg1, %arg0, %c0_i32 : i32, i32, i32
  }
}

</mosaic_0001>

<bundles_post_ra>
// kernel: positional_encoding_forward.1
= control target key start
LH: loop header
LB: loop body
LE: loop exit
PB: predicated region body
PF: predicated region fallthrough
CT: control target
= control target key end

     0   :  { %9 = vsyncpa [#allocation5], 0  ;;  %s697_s0 = inlined_call_operand.<no memory space> [shape: s32[1], index: 0, kind: input, shape index: {}]   ;;  %s698_s1 = inlined_call_operand.hbm [shape: f32[2,8,32], index: 1, kind: input, shape index: {}]   ;;  %s699_s2 = inlined_call_operand.vmem [shape: f32[8,32], index: 2, kind: input, shape index: {}]   ;;  %s700_s3 = inlined_call_operand.hbm [shape: f32[2,8,32], index: 3, kind: output, shape index: {}]  }
   0x1   :  { %11 = vsyncpa [#allocation5 + $0x1], 0 }
   0x2   :  { %12 = vsyncpa [#allocation6], 0 }
   0x3   :  { %14 = vsyncpa [#allocation6 + $0x1], 0  ;;  %s522_s12 = smov 0   ;;  %s524_s13 = smov 0  }
   0x4   :  { %s526_s14 = smov 0   ;;  %s528_s0 = smov 0  }
   0x5   :  { %s530_s15 = smov 0   ;;  %s532_s16 = smov 0  }
   0x6 LB: > { %s310_s17 = sadd.s32 4294967295, %s498_s16   ;;  %s311_s18 = sadd.s32 4294967294, %s498_s16   ;;  %s498_s16 = sphi %s532_s16, %s20_s16   ;;  %s494_s15 = sphi %s530_s15, %s716_s15   ;;  %s490_s0 = sphi %s528_s0, %s715_s0   ;;  %s486_s14 = sphi %s526_s14, %s714_s14   ;;  %s482_s13 = sphi %s524_s13, %s713_s13   ;;  %s478_s12 = sphi %s522_s12, %s712_s12  }
   0x7   : > { %s29_s19 = sadd.s32 1, %s494_s15  ;;  %s41_s20 = sadd.s32 1, %s486_s14 }
   0x8   : > { %p30_p0 = scmp.ge.s32.totalorder %s29_s19, 2  ;;  %p48_p1 = scmp.ne.s32.totalorder %s486_s14, %s482_s13 }
   0x9   : > { %p49_p2 = scmp.eq.s32.totalorder %s498_s16, 0  ;;  %p54_p3 = scmp.ne.s32.totalorder %s482_s13, %s478_s12 }
   0xa   : > { %s718_s19 = smov (%p30_p0, %s29_s19), 0  ;;  %p55_p5 = scmp.eq.s32.totalorder %s310_s17, 0 }
   0xb   : > { %p563_p4 = por %p49_p2, %p48_p1  ;;  %s36_s22 = ssub.s32 %s494_s15, %s718_s19 }
   0xc   : > { %p106_p6 = scmp.eq.s32.totalorder %s310_s17, 1  ;;  %p39_p7 = scmp.eq.s32.totalorder %s36_s22, 0 }
   0xd   : > { %p569_p8 = por %p55_p5, %p54_p3  ;;  %p112_p10 = scmp.eq.s32.totalorder %s311_s18, 1 }
   0xe   : > { %p573_p9 = por %p106_p6, %p48_p1  ;;  %p336_p13 = scmp.lt.s32.totalorder %s498_s16, 2 }
   0xf   : > { %s578_s25 = scalar_select %p39_p7, %s486_s14, %s41_s20  }
  0x10   : > { %s704_s24 = scalar_select %p573_p9, 1, 0 }
  0x11   : > { %p580_p11 = por %p112_p10, %p54_p3  ;;  %s139_s27 = sand.u32 1, %s486_s14  }
  0x12   : > { %s315_s28 = sshll.u32 %s139_s27, 3  ;;  %s316_s29 = sshll.u32 %s494_s15, 7 }
  0x13   : > { %s705_s26 = scalar_select %p580_p11, 1, 0 }
  0x14   : > { %s591_s5 = scalar_lea.hbm %s698_s1, %s316_s29  ;;  %s143_s6 = scalar_lea.vmem [#allocation4], %s315_s28 }
  0x15   : > { %s151_s7 = sshll.u32 %s143_s6, 4  ;;  %p597_p0 = pnand %p336_p13, %p563_p4  ;;  %s593_s7 = int_to_ptr.vmem [resolvable:$true] %s151_s7 }
  0x16   : > { %s140_s9 = scalar_lea.sflag [#allocation5], %s139_s27  ;;  %s386_s10 = scalar_lea.hbm %s591_s5, 128 }
  0x17   : > { %p387_p3 = scmp.ne.s32.totalorder %s591_s5, %s386_s10  ;;  %p388_p5 = pneg %p597_p0 }
  0x18   : > { %s391_s18 = scalar_lea.hbm %s698_s1, 256  ;;  %p392_p4 = scmp.lt.u32.totalorder %s591_s5, %s698_s1 }
  0x19   : > { %p389_p6 = pnand %p388_p5, %p387_p3  ;;  %p393_p10 = scmp.lt.u32.totalorder %s391_s18, %s386_s10 }
  0x1a   : > { %p395_p12 = scmp.lt.u32.totalorder %s386_s10, %s591_s5 }
  0x1b   : > { %p390_p7 = pneg %p389_p6  ;;  %p394_p13 = por %p393_p10, %p392_p4 }
  0x1d   : > { %p396_p1 = por %p395_p12, %p394_p13 }
  0x1f   : > { %p397_p2 = pnand %p396_p1, %p390_p7 }
  0x21   : > { %400 = shalt.err (!%p397_p2)
}
  0x22   : > { %s401_s22 = scalar_lea.vmem %s593_s7, 128  ;;  %s500_s27 = smov [#allocation4]  }
  0x23   : > { %p402_p3 = scmp.ne.s32.totalorder %s593_s7, %s401_s22  ;;  %s406_s28 = sshll.u32 %s500_s27, 4  ;;  %s407_s28 = int_to_ptr.vmem [resolvable:$false] %s406_s28 }
  0x24   : > { %s408_s29 = scalar_lea.vmem %s407_s28, 256  ;;  %p409_p9 = scmp.lt.s32.totalorder %s593_s7, %s407_s28 }
  0x25   : > { %p404_p6 = pnand %p402_p3, %p388_p5  ;;  %p410_p4 = scmp.lt.s32.totalorder %s408_s29, %s401_s22 }
  0x27   : > { %p405_p11 = pneg %p404_p6  ;;  %p411_p10 = por %p410_p4, %p409_p9 }
  0x29   : > { %p412_p12 = pnand %p411_p10, %p405_p11 }
  0x2b   : > { %415 = shalt.err (!%p412_p12)
}
  0x2c   : > { %331 = dma.hbm_to_vmem [thread:$0]  (!%p597_p0), %s591_s5, 128, %s593_s7, %s140_s9  }
  0x2d   : > { %p707_p1 = scmp.lt.s32.totalorder %s498_s16, 3  ;;  %p708_p2 = scmp.ge.s32.totalorder %s498_s16, 1 }
  0x2f   : > { %p157_p5 = pnand %p708_p2, %p707_p1 }
  0x30   : > { %s633_s30 = sand.u32 (!%p157_p5), 1, %s482_s13  }
  0x31   : > { %160 = sbr.rel (%p157_p5) target bundleno = 83 (0x53), region = 28  ;;  %s318_s4 = sshll.u32 (!%p157_p5), %s633_s30, 3 }
  0x32   : > { %s163_s6 = scalar_lea.sflag (!%p157_p5), [#allocation5], %s633_s30  ;;  %s166_s10 = scalar_lea.vmem (!%p157_p5), [#allocation4], %s318_s4 }
  0x38   : > { %469 = dma.done.wait (%p569_p8), %s163_s6, 128  }
  0x39   : > { %471 = vsyncadd (%p569_p8), %s163_s6, 4294967168  ;;  %s190_s5 = scalar_lea.vmem [#allocation7], %s318_s4  ;;  %s321_s8 = sshll.u32 %s490_s0, 7  ;;  %v195_v0 = vld [vmem:[%s166_s10] sm:$0xff]  ;;  %vm198_vm0 = vcmask 261120  }
  0x3a   : > { %s215_s7 = sshll.u32 %s190_s5, 4  ;;  %v196_v1 = vld [vmem:[%s699_s2] sm:$0xff]  ;;  %s650_s23 = scalar_lea.hbm %s700_s3, %s321_s8  ;;  %s645_s7 = int_to_ptr.vmem [resolvable:$true] %s215_s7 }
  0x3b   : > { %v197_v2 = vadd.f32 %v196_v1, %v195_v0  ;;  %s201_s20 = scalar_lea.sflag [#allocation6], %s633_s30  ;;  %s416_s0 = scalar_lea.vmem %s645_s7, 128 }
  0x3c   : > { %p417_p8 = scmp.ne.s32.totalorder %s645_s7, %s416_s0  ;;  %p709_p9 = scmp.ne.s32.totalorder %s704_s24, 0 }
  0x3d   : > { %199 = vst.msk [vmem:[%s190_s5] sm:$0xff] %vm198_vm0, %v197_v2  ;;  %s501_s21 = smov [#allocation7]  }
  0x3e   : > { %p418_p11 = pnand %p417_p8, %p709_p9  ;;  %s420_s22 = sshll.u32 %s501_s21, 4  ;;  %s421_s22 = int_to_ptr.vmem [resolvable:$false] %s420_s22 }
  0x3f   : > { %s422_s27 = scalar_lea.vmem %s421_s22, 256  ;;  %p423_p7 = scmp.lt.s32.totalorder %s645_s7, %s421_s22 }
  0x40   : > { %p419_p0 = pneg %p418_p11  ;;  %p424_p13 = scmp.lt.s32.totalorder %s422_s27, %s416_s0 }
  0x42   : > { %p425_p3 = por %p424_p13, %p423_p7 }
  0x44   : > { %p426_p6 = pnand %p425_p3, %p419_p0 }
  0x46   : > { %429 = shalt.err (!%p426_p6)
}
  0x47   : > { %s430_s28 = scalar_lea.hbm %s650_s23, 128  ;;  %s434_s4 = scalar_lea.hbm %s700_s3, 256 }
  0x48   : > { %p431_p4 = scmp.ne.s32.totalorder %s650_s23, %s430_s28  ;;  %p435_p1 = scmp.lt.u32.totalorder %s650_s23, %s700_s3 }
  0x49   : > { %p436_p2 = scmp.lt.u32.totalorder %s434_s4, %s430_s28  ;;  %p438_p8 = scmp.lt.u32.totalorder %s430_s28, %s650_s23 }
  0x4a   : > { %p432_p10 = pnand %p431_p4, %p709_p9 }
  0x4b   : > { %p437_p5 = por %p436_p2, %p435_p1 }
  0x4c   : > { %p433_p12 = pneg %p432_p10 }
  0x4d   : > { %p439_p11 = por %p438_p8, %p437_p5 }
  0x4f   : > { %p440_p0 = pnand %p439_p11, %p433_p12 }
  0x51   : > { %443 = shalt.err (!%p440_p0)
}
  0x52   : > { %326 = dma.vmem_to_hbm [thread:$0]  (%p709_p9), %s645_s7, 128, %s650_s23, %s201_s20  }
  0x53 PF: > { %s227_s5 = sand.u32 1, %s478_s12   ;;  %p710_p7 = scmp.ne.s32.totalorder %s705_s26, 0 }
  0x54   : > { %p711_p13 = scmp.ge.s32.totalorder %s498_s16, 2  ;;  %s228_s8 = scalar_lea.sflag [#allocation6], %s227_s5 }
  0x56   : > { %p333_p3 = pnand %p711_p13, %p710_p7 }
  0x58   : > { %473 = dma.done.wait (!%p333_p3), %s228_s8, 128  }
  0x59   : > { %475 = vsyncadd (!%p333_p3), %s228_s8, 4294967168  ;;  %s20_s16 = sadd.s32 1, %s498_s16   ;;  %s712_s12 = smov %s482_s13 }
  0x5a   : > { %p17_p6 = scmp.ge.s32.totalorder %s20_s16, 4   ;;  %s713_s13 = smov %s486_s14 }
  0x5b   : > { %s714_s14 = smov %s578_s25  ;;  %s715_s0 = smov %s494_s15 }
  0x5c   : > { %s716_s15 = smov %s718_s19  ;;  %19 = sbr.rel (!%p17_p6) target bundleno = 6 (0x6), region = 76 }
  0x63   :  { %233 = vsyncpa [#allocation5], 1 }
  0x64   :  { %235 = vsyncpa [#allocation5 + $0x1], 1 }
  0x65   :  { %236 = vsyncpa [#allocation6], 1 }
  0x66   :  { %238 = vsyncpa [#allocation6 + $0x1], 1 }

</bundles_post_ra>
